<compile_context>
chip_gen: v7x
topology: tpu7x:2x2x1
jax: 0.10.0
libtpu: 0.0.40
codegen_flags: <defaults>
</compile_context>

<pallas_src>
import functools

import jax
import jax.numpy as jnp
from jax.experimental import pallas as pl
from jax.experimental.pallas import tpu as pltpu

NUM_GROUPS = 16
EPS = 1e-6


def _round_up(x, m):
    return (x + m - 1) // m * m


def _vmem_limit_bytes():
    # Generation-aware budget: ~3/4 of physical VMEM (v7x: 48 MiB, v5e/v6e: 96 MiB).
    try:
        phys = pltpu.get_tpu_info().vmem_capacity_bytes
    except Exception:
        phys = 64 * 1024 * 1024
    return int(phys * 3 // 4)


def lse_gather_conv_kernel(geo_ref, stk_ref, idx_ref, w_ref, b_ref,
                           inter_ref, stats_ref, *, d, M, TM, masked,
                           gather_dtype):
    """Pass 1: fused one-hot MXU gather + folded 1x1 conv + GN partial stats."""
    t = pl.program_id(1)

    geo = geo_ref[0]          # (4, TM)   f32: [center xyz ; dist]
    stk = stk_ref[0]          # (d+df, N) gather_dtype: [(W2-W3)@coords ; feats]
    idx = idx_ref[0]          # (1, TM)   int32 flattened KNN ids

    N = stk.shape[1]
    ddf = stk.shape[0]

    # --- single fused neighbor gather via a one-hot MXU matmul ---------------
    j = jax.lax.broadcasted_iota(jnp.int32, (N, TM), 0)            # source id
    onehot = (j == idx).astype(gather_dtype)                       # (N, TM)
    gathered = jnp.dot(stk, onehot,
                       preferred_element_type=jnp.float32)         # (d+df, TM)

    # --- folded 1x1 conv over the 10 geometric channels -----------------------
    #   y = W1 ctr + W2 nbr + W3 (ctr-nbr) + W4 dist + b
    #     = [(W1+W3)|W4] @ [ctr;dist] + (W2-W3) @ nbr + b
    #   the second term is rows [0:d] of the fused gather (precomputed operand).
    y = (jnp.dot(w_ref[...], geo, preferred_element_type=jnp.float32)
         + gathered[0:d, :] + b_ref[...])                           # (d, TM)

    inter_ref[0, 0:d, :] = y                                        # pre-norm conv out
    inter_ref[0, d:ddf, :] = gathered[d:ddf, :]                     # neighbor features

    # --- per-channel sum / sum-of-squares (two-sweep GroupNorm, sweep 1) -----
    # NOTE: single-pass E[x^2]-E[x]^2 variance (clamped >= 0 in the wrapper);
    # fine at these scales, a Welford formulation would be more robust.
    if masked:
        lane = jax.lax.broadcasted_iota(jnp.int32, (1, TM), 1) + t * TM
        ym = jnp.where(lane < M, y, 0.0)
    else:
        ym = y
    csum = jnp.sum(ym, axis=1, keepdims=True)                       # (d, 1)
    csq = jnp.sum(ym * ym, axis=1, keepdims=True)                   # (d, 1)

    @pl.when(t == 0)
    def _():
        stats_ref[...] = jnp.zeros_like(stats_ref)

    stats_ref[0, :, 0:1] = stats_ref[0, :, 0:1] + csum
    stats_ref[0, :, 1:2] = stats_ref[0, :, 1:2] + csq


def lse_norm_kernel(inter_ref, aff_ref, o_ref, *, d):
    """Pass 2: folded GroupNorm affine (per-channel scale/shift) + ReLU."""
    ddf = inter_ref.shape[1]
    y = inter_ref[0, 0:d, :]
    a = aff_ref[0, :, 0:1]                                          # (d, 1) scale
    s = aff_ref[0, :, 1:2]                                          # (d, 1) shift
    o_ref[0, 0:d, :] = jnp.maximum(y * a + s, 0.0)
    o_ref[0, d:ddf, :] = inter_ref[0, d:ddf, :]                     # feats passthrough


def local_spatial_encoding(coords, features, idx, dist, W, bias, gamma, beta,
                           gather_dtype=jnp.bfloat16):
    """coords (B,N,3), features (B,df,N,1), idx (B,N,K) int, dist (B,N,K)
    -> (B, d+df, N, K) float32."""
    B, N, _ = coords.shape
    d = W.shape[0]
    df = features.shape[1]
    K = idx.shape[-1]
    assert d % NUM_GROUPS == 0, "GroupNorm(16, d) requires d % 16 == 0"

    M = N * K
    cg = d // NUM_GROUPS
    TM = min(2048, _round_up(M, 128))        # lane tile, multiple of 128
    Mp = _round_up(M, TM)
    n_t = Mp // TM

    coords_t = jnp.transpose(coords, (0, 2, 1)).astype(jnp.float32)   # (B, 3, N)
    feats2 = features[:, :, :, 0].astype(jnp.float32)                 # (B, df, N)

    # fold the channel-concat structure into the conv weight (exact algebra)
    Wf = W.astype(jnp.float32)
    Wc = Wf[:, 0:3] + Wf[:, 6:9]             # acts on center coords
    Wn = Wf[:, 3:6] - Wf[:, 6:9]             # acts on neighbor coords
    Wd = Wf[:, 9:10]                         # acts on dist
    Wg = jnp.concatenate([Wc, Wd], axis=1)                            # (d, 4)
    bias2 = bias.astype(jnp.float32).reshape(d, 1)

    # geometric input: center coords expanded per-K + dist, lane-flattened
    exp_ctr = jnp.broadcast_to(coords_t[:, :, :, None],
                               (B, 3, N, K)).reshape(B, 3, M)
    geo = jnp.concatenate(
        [exp_ctr, dist.astype(jnp.float32).reshape(B, 1, M)], axis=1)  # (B, 4, M)
    idx_flat = idx.astype(jnp.int32).reshape(B, 1, M)
    if Mp != M:
        geo = jnp.pad(geo, ((0, 0), (0, 0), (0, Mp - M)))
        idx_flat = jnp.pad(idx_flat, ((0, 0), (0, 0), (0, Mp - M)))

    # fused gather operand: [(W2-W3)@coords ; features]  -> ONE MXU gather pass
    wn_coords = jnp.einsum('oc,bcn->bon', Wn, coords_t)               # (B, d, N)
    stacked = jnp.concatenate([wn_coords, feats2],
                              axis=1).astype(gather_dtype)            # (B, d+df, N)

    vmem_limit = _vmem_limit_bytes()

    # ---- pass 1: gather + conv + partial GroupNorm stats ---------------------
    k1 = functools.partial(lse_gather_conv_kernel, d=d, M=M, TM=TM,
                           masked=(Mp != M), gather_dtype=gather_dtype)
    inter, stats = pl.pallas_call(
        k1,
        out_shape=(jax.ShapeDtypeStruct((B, d + df, Mp), jnp.float32),
                   jax.ShapeDtypeStruct((B, d, 2), jnp.float32)),
        grid_spec=pltpu.PrefetchScalarGridSpec(
            num_scalar_prefetch=0,
            grid=(B, n_t),
            in_specs=[
                pl.BlockSpec((1, 4, TM), lambda b, t: (b, 0, t)),
                pl.BlockSpec((1, d + df, N), lambda b, t: (b, 0, 0)),  # resident
                pl.BlockSpec((1, 1, TM), lambda b, t: (b, 0, t)),
                pl.BlockSpec((d, 4), lambda b, t: (0, 0)),             # resident
                pl.BlockSpec((d, 1), lambda b, t: (0, 0)),             # resident
            ],
            out_specs=[
                pl.BlockSpec((1, d + df, TM), lambda b, t: (b, 0, t)),
                pl.BlockSpec((1, d, 2), lambda b, t: (b, 0, 0)),       # accumulator
            ],
        ),
        compiler_params=pltpu.CompilerParams(
            dimension_semantics=("parallel", "arbitrary"),
            vmem_limit_bytes=vmem_limit),
    )(geo, stacked, idx_flat, Wg, bias2)

    # ---- tiny group reduction + affine fold (plain JAX, B*d elements) --------
    denom = float(cg * M)                     # true (unpadded) count per group
    csum_g = stats[:, :, 0].reshape(B, NUM_GROUPS, cg).sum(-1)        # (B, 16)
    csq_g = stats[:, :, 1].reshape(B, NUM_GROUPS, cg).sum(-1)
    mean_g = csum_g / denom
    var_g = jnp.maximum(csq_g / denom - mean_g * mean_g, 0.0)         # clamp
    inv_g = jax.lax.rsqrt(var_g + EPS)
    mean_c = jnp.repeat(mean_g, cg, axis=1)                           # (B, d)
    inv_c = jnp.repeat(inv_g, cg, axis=1)
    a = gamma.astype(jnp.float32)[None, :] * inv_c
    s = beta.astype(jnp.float32)[None, :] - mean_c * a
    aff = jnp.stack([a, s], axis=-1)                                  # (B, d, 2)

    # ---- pass 2: normalize + ReLU (fully parallel, both TCs on v7x) ----------
    k2 = functools.partial(lse_norm_kernel, d=d)
    out = pl.pallas_call(
        k2,
        out_shape=jax.ShapeDtypeStruct((B, d + df, Mp), jnp.float32),
        grid_spec=pltpu.PrefetchScalarGridSpec(
            num_scalar_prefetch=0,
            grid=(B, n_t),
            in_specs=[
                pl.BlockSpec((1, d + df, TM), lambda b, t: (b, 0, t)),
                pl.BlockSpec((1, d, 2), lambda b, t: (b, 0, 0)),       # resident
            ],
            out_specs=pl.BlockSpec((1, d + df, TM), lambda b, t: (b, 0, t)),
        ),
        compiler_params=pltpu.CompilerParams(
            dimension_semantics=("parallel", "parallel"),
            vmem_limit_bytes=vmem_limit),
    )(inter, aff)

    if Mp != M:                     # only when N*K % 128 != 0; otherwise free reshape
        out = out[:, :, :M]
    return out.reshape(B, d + df, N, K)


def reference(coords, features, idx, dist, W, bias, gamma, beta):
    """Plain-JAX port of LocalSpatialEncoding.forward (PyTorch)."""
    B, N, K = idx.shape
    d = W.shape[0]
    df = features.shape[1]
    coords_t = jnp.transpose(coords, (0, 2, 1))                       # (B, 3, N)
    exp_coords = jnp.broadcast_to(coords_t[..., None], (B, 3, N, K))
    idx3 = jnp.broadcast_to(idx[:, None, :, :], (B, 3, N, K))
    nbr_coords = jnp.take_along_axis(exp_coords, idx3, axis=2)
    exp_feats = jnp.broadcast_to(features, (B, df, N, K))
    idxf = jnp.broadcast_to(idx[:, None, :, :], (B, df, N, K))
    nbr_feats = jnp.take_along_axis(exp_feats, idxf, axis=2)
    concat = jnp.concatenate(
        [exp_coords, nbr_coords, exp_coords - nbr_coords, dist[:, None, :, :]],
        axis=1)                                                       # (B, 10, N, K)
    y = jnp.einsum('oc,bcnk->bonk', W, concat) + bias[None, :, None, None]
    yg = y.reshape(B, NUM_GROUPS, d // NUM_GROUPS, N, K)
    mean = yg.mean(axis=(2, 3, 4), keepdims=True)
    var = ((yg - mean) ** 2).mean(axis=(2, 3, 4), keepdims=True)      # biased var
    yn = ((yg - mean) / jnp.sqrt(var + EPS)).reshape(B, d, N, K)
    mlp = jnp.maximum(yn * gamma[None, :, None, None] + beta[None, :, None, None], 0.0)
    return jnp.concatenate([mlp, nbr_feats], axis=1)


def _run_case(seed, B, d, N, K):
    key = jax.random.PRNGKey(seed)
    kc, kf, ki, kd, kw, kb, kg, kbe = jax.random.split(key, 8)
    coords = jax.random.normal(kc, (B, N, 3), dtype=jnp.float32)
    features = jax.random.normal(kf, (B, d, N, 1), dtype=jnp.float32)
    idx = jax.random.randint(ki, (B, N, K), 0, N, dtype=jnp.int32)
    dist = jax.random.uniform(kd, (B, N, K), dtype=jnp.float32)
    W = 0.1 * jax.random.normal(kw, (d, 10), dtype=jnp.float32)
    bias = 0.1 * jax.random.normal(kb, (d,), dtype=jnp.float32)
    gamma = 1.0 + 0.1 * jax.random.normal(kg, (d,), dtype=jnp.float32)
    beta = 0.1 * jax.random.normal(kbe, (d,), dtype=jnp.float32)

    out = local_spatial_encoding(coords, features, idx, dist, W, bias, gamma, beta)
    out = jax.block_until_ready(out)
    ref = reference(coords, features, idx, dist, W, bias, gamma, beta)

    assert out.shape == (B, 2 * d, N, K), out.shape
    err = jnp.max(jnp.abs(out - ref))
    # bf16 gather of the neighbor operand rounds values to ~2^-9 rel -> loose tol.
    assert jnp.allclose(out, ref, atol=2e-2, rtol=2e-2), \
        f"case (B={B},d={d},N={N},K={K}) max abs err = {err}"


if __name__ == "__main__":
    # d divisible by 16 (GroupNorm groups).
    _run_case(0, B=2, d=32, N=16, K=8)    # N*K = 128 exactly (no padding), 1 tile
    _run_case(0, B=2, d=32, N=20, K=9)    # N*K = 180 -> padded tail path exercised
    _run_case(0, B=1, d=32, N=160, K=16)  # N*K = 2560 -> 2 M-tiles, stats accumulation
    print("KERNEL_OK")
</pallas_src>

<mosaic_0001>
module attributes {stable_mosaic.version = 11 : i64} {
  func.func @lse_gather_conv_kernel(%arg0: i32, %arg1: i32, %arg2: memref<1x4x128xf32, #tpu.memory_space<vmem>>, %arg3: memref<1x64x16xbf16, #tpu.memory_space<vmem>>, %arg4: memref<1x1x128xi32, #tpu.memory_space<vmem>>, %arg5: memref<32x4xf32, #tpu.memory_space<vmem>>, %arg6: memref<32x1xf32, #tpu.memory_space<vmem>>, %arg7: memref<1x64x128xf32, #tpu.memory_space<vmem>>, %arg8: memref<1x32x2xf32, #tpu.memory_space<vmem>>) attributes {dimension_semantics = [#tpu.dimension_semantics<parallel>, #tpu.dimension_semantics<arbitrary>], iteration_bounds = array<i64: 2, 1>, scalar_prefetch = 0 : i64, scratch_operands = 0 : i64, tpu.core_type = #tpu.core_type<tc>, window_params = [{transform_indices = @transform_0, window_bounds = array<i64: 1, 4, 128>}, {transform_indices = @transform_1, window_bounds = array<i64: 1, 64, 16>}, {transform_indices = @transform_2, window_bounds = array<i64: 1, 1, 128>}, {pipeline_mode = #tpu.pipeline_mode<synchronous>, transform_indices = @transform_3, window_bounds = array<i64: 32, 4>}, {pipeline_mode = #tpu.pipeline_mode<synchronous>, transform_indices = @transform_4, window_bounds = array<i64: 32, 1>}, {transform_indices = @transform_5, window_bounds = array<i64: 1, 64, 128>}, {transform_indices = @transform_6, window_bounds = array<i64: 1, 32, 2>}]} {
    %c0 = arith.constant 0 : index
    %c0_0 = arith.constant 0 : index
    %c0_1 = arith.constant 0 : index
    %0 = vector.load %arg2[%c0, %c0_0, %c0_1] : memref<1x4x128xf32, #tpu.memory_space<vmem>>, vector<1x4x128xf32>
    %1 = vector.shape_cast %0 : vector<1x4x128xf32> to vector<4x128xf32>
    %c0_2 = arith.constant 0 : index
    %c0_3 = arith.constant 0 : index
    %c0_4 = arith.constant 0 : index
    %2 = vector.load %arg3[%c0_2, %c0_3, %c0_4] : memref<1x64x16xbf16, #tpu.memory_space<vmem>>, vector<1x64x16xbf16>
    %3 = vector.shape_cast %2 : vector<1x64x16xbf16> to vector<64x16xbf16>
    %c0_5 = arith.constant 0 : index
    %c0_6 = arith.constant 0 : index
    %c0_7 = arith.constant 0 : index
    %4 = vector.load %arg4[%c0_5, %c0_6, %c0_7] : memref<1x1x128xi32, #tpu.memory_space<vmem>>, vector<1x1x128xi32>
    %5 = vector.shape_cast %4 : vector<1x1x128xi32> to vector<1x128xi32>
    %6 = tpu.iota {dimensions = array<i32: 0>} : vector<16x128xi32>
    %7 = vector.broadcast %5 : vector<1x128xi32> to vector<16x128xi32>
    %8 = arith.cmpi eq, %6, %7 : vector<16x128xi32>
    %9 = arith.extui %8 : vector<16x128xi1> to vector<16x128xi32>
    %10 = arith.sitofp %9 : vector<16x128xi32> to vector<16x128xf32>
    %11 = arith.truncf %10 : vector<16x128xf32> to vector<16x128xbf16>
    %cst = arith.constant dense<0.000000e+00> : vector<64x128xf32>
    %12 = tpu.matmul %3, %11, %cst {dimension_numbers = #tpu.dot_dimension_numbers<[1], [0], [0], [1], [0, 0, 1, 1], [], []>} : vector<64x16xbf16>, vector<16x128xbf16>, vector<64x128xf32> -> vector<64x128xf32>
    %c0_8 = arith.constant 0 : index
    %c0_9 = arith.constant 0 : index
    %13 = vector.load %arg5[%c0_8, %c0_9] : memref<32x4xf32, #tpu.memory_space<vmem>>, vector<32x4xf32>
    %cst_10 = arith.constant dense<0.000000e+00> : vector<32x128xf32>
    %14 = tpu.matmul %13, %1, %cst_10 {dimension_numbers = #tpu.dot_dimension_numbers<[1], [0], [0], [1], [0, 0, 1, 1], [], []>} : vector<32x4xf32>, vector<4x128xf32>, vector<32x128xf32> -> vector<32x128xf32>
    %15 = vector.extract_strided_slice %12 {offsets = [0, 0], sizes = [32, 128], strides = [1, 1]} : vector<64x128xf32> to vector<32x128xf32>
    %16 = arith.addf %14, %15 : vector<32x128xf32>
    %c0_11 = arith.constant 0 : index
    %c0_12 = arith.constant 0 : index
    %17 = vector.load %arg6[%c0_11, %c0_12] : memref<32x1xf32, #tpu.memory_space<vmem>>, vector<32x1xf32>
    %18 = vector.broadcast %17 : vector<32x1xf32> to vector<32x128xf32>
    %19 = arith.addf %16, %18 : vector<32x128xf32>
    %c0_13 = arith.constant 0 : index
    %c0_14 = arith.constant 0 : index
    %c0_15 = arith.constant 0 : index
    %20 = vector.load %arg7[%c0_13, %c0_14, %c0_15] : memref<1x64x128xf32, #tpu.memory_space<vmem>>, vector<1x32x128xf32>
    %21 = vector.shape_cast %20 : vector<1x32x128xf32> to vector<32x128xf32>
    %22 = vector.shape_cast %19 : vector<32x128xf32> to vector<1x32x128xf32>
    tpu.vector_store %arg7[%c0_13, %c0_14, %c0_15], %22 {strides = array<i32>} : memref<1x64x128xf32, #tpu.memory_space<vmem>>, vector<1x32x128xf32>,
    %23 = vector.extract_strided_slice %12 {offsets = [32, 0], sizes = [32, 128], strides = [1, 1]} : vector<64x128xf32> to vector<32x128xf32>
    %c0_16 = arith.constant 0 : index
    %c32 = arith.constant 32 : index
    %c0_17 = arith.constant 0 : index
    %24 = vector.load %arg7[%c0_16, %c32, %c0_17] : memref<1x64x128xf32, #tpu.memory_space<vmem>>, vector<1x32x128xf32>
    %25 = vector.shape_cast %24 : vector<1x32x128xf32> to vector<32x128xf32>
    %26 = vector.shape_cast %23 : vector<32x128xf32> to vector<1x32x128xf32>
    tpu.vector_store %arg7[%c0_16, %c32, %c0_17], %26 {strides = array<i32>} : memref<1x64x128xf32, #tpu.memory_space<vmem>>, vector<1x32x128xf32>,
    %cst_18 = arith.constant dense<0.000000e+00> : vector<32xf32>
    %27 = vector.multi_reduction <add>, %19, %cst_18 [1] : vector<32x128xf32> to vector<32xf32>
    %28 = vector.shape_cast %27 : vector<32xf32> to vector<32x1xf32>
    %29 = arith.mulf %19, %19 : vector<32x128xf32>
    %cst_19 = arith.constant dense<0.000000e+00> : vector<32xf32>
    %30 = vector.multi_reduction <add>, %29, %cst_19 [1] : vector<32x128xf32> to vector<32xf32>
    %31 = vector.shape_cast %30 : vector<32xf32> to vector<32x1xf32>
    %c0_i32 = arith.constant 0 : i32
    %32 = arith.cmpi eq, %arg1, %c0_i32 : i32
    %33 = arith.extui %32 : i1 to i32
    %c0_i32_20 = arith.constant 0 : i32
    %34 = arith.cmpi ne, %33, %c0_i32_20 : i32
    scf.if %34 {
      %cst_32 = arith.constant 0.000000e+00 : f32
      %47 = vector.broadcast %cst_32 : f32 to vector<1x32x2xf32>
      %c0_33 = arith.constant 0 : index
      %c0_34 = arith.constant 0 : index
      %c0_35 = arith.constant 0 : index
      %48 = vector.load %arg8[%c0_33, %c0_34, %c0_35] : memref<1x32x2xf32, #tpu.memory_space<vmem>>, vector<1x32x2xf32>
      tpu.vector_store %arg8[%c0_33, %c0_34, %c0_35], %47 {strides = array<i32>} : memref<1x32x2xf32, #tpu.memory_space<vmem>>, vector<1x32x2xf32>,
    } else {
    }
    %c0_21 = arith.constant 0 : index
    %c0_22 = arith.constant 0 : index
    %c0_23 = arith.constant 0 : index
    %35 = vector.load %arg8[%c0_21, %c0_22, %c0_23] : memref<1x32x2xf32, #tpu.memory_space<vmem>>, vector<1x32x1xf32>
    %36 = vector.shape_cast %35 : vector<1x32x1xf32> to vector<32x1xf32>
    %37 = arith.addf %36, %28 : vector<32x1xf32>
    %c0_24 = arith.constant 0 : index
    %c0_25 = arith.constant 0 : index
    %c0_26 = arith.constant 0 : index
    %38 = vector.load %arg8[%c0_24, %c0_25, %c0_26] : memref<1x32x2xf32, #tpu.memory_space<vmem>>, vector<1x32x1xf32>
    %39 = vector.shape_cast %38 : vector<1x32x1xf32> to vector<32x1xf32>
    %40 = vector.shape_cast %37 : vector<32x1xf32> to vector<1x32x1xf32>
    tpu.vector_store %arg8[%c0_24, %c0_25, %c0_26], %40 {strides = array<i32>} : memref<1x32x2xf32, #tpu.memory_space<vmem>>, vector<1x32x1xf32>,
    %c0_27 = arith.constant 0 : index
    %c0_28 = arith.constant 0 : index
    %c1 = arith.constant 1 : index
    %41 = vector.load %arg8[%c0_27, %c0_28, %c1] : memref<1x32x2xf32, #tpu.memory_space<vmem>>, vector<1x32x1xf32>
    %42 = vector.shape_cast %41 : vector<1x32x1xf32> to vector<32x1xf32>
    %43 = arith.addf %42, %31 : vector<32x1xf32>
    %c0_29 = arith.constant 0 : index
    %c0_30 = arith.constant 0 : index
    %c1_31 = arith.constant 1 : index
    %44 = vector.load %arg8[%c0_29, %c0_30, %c1_31] : memref<1x32x2xf32, #tpu.memory_space<vmem>>, vector<1x32x1xf32>
    %45 = vector.shape_cast %44 : vector<1x32x1xf32> to vector<32x1xf32>
    %46 = vector.shape_cast %43 : vector<32x1xf32> to vector<1x32x1xf32>
    tpu.vector_store %arg8[%c0_29, %c0_30, %c1_31], %46 {strides = array<i32>} : memref<1x32x2xf32, #tpu.memory_space<vmem>>, vector<1x32x1xf32>,
    return
  }
  func.func @transform_0(%arg0: i32, %arg1: i32) -> (i32, i32, i32) {
    %c0_i32 = arith.constant 0 : i32
    %c0_i32_0 = arith.constant 0 : i32
    return %arg0, %c0_i32, %arg1 : i32, i32, i32
  }
  func.func @transform_1(%arg0: i32, %arg1: i32) -> (i32, i32, i32) {
    %c0_i32 = arith.constant 0 : i32
    %c0_i32_0 = arith.constant 0 : i32
    %c0_i32_1 = arith.constant 0 : i32
    return %arg0, %c0_i32, %c0_i32_0 : i32, i32, i32
  }
  func.func @transform_2(%arg0: i32, %arg1: i32) -> (i32, i32, i32) {
    %c0_i32 = arith.constant 0 : i32
    %c0_i32_0 = arith.constant 0 : i32
    return %arg0, %c0_i32, %arg1 : i32, i32, i32
  }
  func.func @transform_3(%arg0: i32, %arg1: i32) -> (i32, i32) {
    %c0_i32 = arith.constant 0 : i32
    %c0_i32_0 = arith.constant 0 : i32
    %c0_i32_1 = arith.constant 0 : i32
    return %c0_i32, %c0_i32_0 : i32, i32
  }
  func.func @transform_4(%arg0: i32, %arg1: i32) -> (i32, i32) {
    %c0_i32 = arith.constant 0 : i32
    %c0_i32_0 = arith.constant 0 : i32
    %c0_i32_1 = arith.constant 0 : i32
    return %c0_i32, %c0_i32_0 : i32, i32
  }
  func.func @transform_5(%arg0: i32, %arg1: i32) -> (i32, i32, i32) {
    %c0_i32 = arith.constant 0 : i32
    %c0_i32_0 = arith.constant 0 : i32
    return %arg0, %c0_i32, %arg1 : i32, i32, i32
  }
  func.func @transform_6(%arg0: i32, %arg1: i32) -> (i32, i32, i32) {
    %c0_i32 = arith.constant 0 : i32
    %c0_i32_0 = arith.constant 0 : i32
    %c0_i32_1 = arith.constant 0 : i32
    return %arg0, %c0_i32, %c0_i32_0 : i32, i32, i32
  }
}

</mosaic_0001>

<bundles_post_ra>
// kernel: tpu_custom_call.1
= control target key start
LH: loop header
LB: loop body
LE: loop exit
PB: predicated region body
PF: predicated region fallthrough
CT: control target
= control target key end

     0   :  { %12 = vsyncpa [#allocation3], 0  ;;  %s1257_s0 = inlined_call_operand.vmem [shape: f32[2,4,128], index: 0, kind: input, shape index: {}]   ;;  %s1258_s1 = inlined_call_operand.vmem [shape: bf16[2,64,16], index: 1, kind: input, shape index: {}]   ;;  %s1259_s2 = inlined_call_operand.vmem [shape: s32[2,1,128], index: 2, kind: input, shape index: {}]   ;;  %s1260_s3 = inlined_call_operand.vmem [shape: f32[32,4], index: 3, kind: input, shape index: {}]   ;;  %s1261_s4 = inlined_call_operand.vmem [shape: f32[32,1], index: 4, kind: input, shape index: {}]   ;;  %s1262_s5 = inlined_call_operand.hbm [shape: f32[2,64,128], index: 5, kind: output, shape index: {0}]   ;;  %s1263_s6 = inlined_call_operand.vmem [shape: f32[2,32,2], index: 6, kind: output, shape index: {1}]  }
   0x1   :  { %14 = vsyncpa [#allocation3 + $0x1], 0  ;;  %s1049_s21 = smov 0   ;;  %s1051_s22 = smov 0  }
   0x2   :  { %s1053_s23 = smov 0   ;;  %s1055_s24 = smov 0  }
   0x3   :  { %s1057_s25 = smov 0   ;;  %s1059_s26 = smov 0  }
   0x4 LB: > { %s797_s27 = sadd.s32 4294967295, %s1006_s26   ;;  %s798_s28 = sadd.s32 4294967294, %s1006_s26   ;;  %s1006_s26 = sphi %s1059_s26, %s20_s26   ;;  %s1002_s25 = sphi %s1057_s25, %s1273_s25   ;;  %s998_s24 = sphi %s1055_s24, %s1272_s24   ;;  %s994_s23 = sphi %s1053_s23, %s1271_s23   ;;  %s990_s22 = sphi %s1051_s22, %s1270_s22   ;;  %s986_s21 = sphi %s1049_s21, %s1269_s21  }
   0x5   : > { %s32_s29 = sadd.s32 1, %s1002_s25  ;;  %s165_s30 = sadd.s32 1, %s994_s23 }
   0x6   : > { %p34_p0 = scmp.ge.s32.totalorder %s32_s29, 2  ;;  %p175_p1 = scmp.ne.s32.totalorder %s994_s23, %s990_s22 }
   0x7   : > { %p176_p2 = scmp.eq.s32.totalorder %s797_s27, 1  ;;  %p181_p3 = scmp.ne.s32.totalorder %s990_s22, %s986_s21 }
   0x8   : > { %s1275_s29 = smov (%p34_p0, %s32_s29), 0  ;;  %p182_p5 = scmp.eq.s32.totalorder %s798_s28, 1 }
   0x9   : > { %1265 = sst [smem:[#allocation5_spill]] %s1275_s29  ;;  %p1089_p4 = por %p176_p2, %p175_p1 }
   0xa   : > { %s160_s8 = ssub.s32 %s1002_s25, %s1275_s29  ;;  %p801_p6 = scmp.ge.s32.totalorder %s1006_s26, 1 }
   0xb   : > { %p163_p7 = scmp.eq.s32.totalorder %s160_s8, 0  ;;  %p1096_p8 = por %p182_p5, %p181_p3 }
   0xc   : > { %p259_p9 = scmp.lt.s32.totalorder %s1006_s26, 3 }
   0xd   : > { %s1102_s10 = scalar_select %p163_p7, %s994_s23, %s165_s30  }
   0xe   : > { %p260_p10 = pnand %p801_p6, %p259_p9 }
   0xf   : > { %p307_p11 = scmp.lt.s32.totalorder (!%p260_p10), %s998_s24, 1  ;;  %v341_v0 = vlaneseq (!%p260_p10)  ;;  %v453_v1 = vld [vmem:[%s1260_s3] sm:$0xff] (!%p260_p10)  ;;  %vm457_vm0 = vcmask (!%p260_p10), 31744   ;;  %v1008_v3 = vmov (!%p260_p10), 0   ;;  %v561_v5 = vld [vmem:[%s1261_s4 + $0x10] sm:$0xff] (!%p260_p10)  ;;  %vm470_vm1 = vcmask (!%p260_p10), 1043456  }
  0x10   : > { %263 = sbr.rel (%p260_p10) target bundleno = 415 (0x19f), region = 40  ;;  %856 = vmatprep.mubr.msk.f32.mxu1 (!%p260_p10), %vm457_vm0, %v453_v1  ;;  %922 = vset.pattern.permute.xlu0 (!%p260_p10), %v1008_v3  ;;  %v559_v4 = vld [vmem:[%s1261_s4] sm:$0xff] (!%p260_p10)  ;;  %v560_v7 = vld [vmem:[%s1261_s4 + $0x8] sm:$0xff] (!%p260_p10)  ;;  %vm375_vm2 = vcmask (!%p260_p10), 130048   ;;  %v455_v9 = vld [vmem:[%s1260_s3 + $0x10] sm:$0xff] (!%p260_p10)  ;;  %vm619_vm6 = vcmask (!%p260_p10), 15360  }
  0x11   : > { %v342_v2 = vshrl.u32 (!%p260_p10), %v341_v0, 7  ;;  %923 = vset.pattern.permute.xlu1 (!%p260_p10), %v1008_v3  ;;  %565 = vperm.xlu0 (!%p260_p10), %922, %v559_v4   ;;  %v454_v8 = vld [vmem:[%s1260_s3 + $0x8] sm:$0xff] (!%p260_p10)  ;;  %v562_v10 = vld [vmem:[%s1261_s4 + $0x18] sm:$0xff] (!%p260_p10)  ;;  %v1009_v15 = vmov (!%p260_p10), 1.0|1.0   ;;  %v1010_v19 = vmov (!%p260_p10), 0.0  }
  0x12   : > { %575 = vperm.xlu1 (!%p260_p10), %923, %v561_v5   ;;  %v456_v14 = vld [vmem:[%s1260_s3 + $0x18] sm:$0xff] (!%p260_p10)  ;;  %s833_s16 = sshll.u32 (!%p260_p10), %s998_s24, 10 }
  0x13   : > { %v343_v6 = vadd.s32 (!%p260_p10), 8, %v342_v2 }
  0x15   : > { %570 = vperm.xlu0 (!%p260_p10), %922, %v560_v7  }
  0x16   : > { %580 = vperm.xlu1 (!%p260_p10), %923, %v562_v10  }
  0x17   : > { %s1110_s13 = scalar_select %p307_p11, %s998_s24, 1 }
  0x18   : > { %s1011_s24 = smov [#allocation2]  }
  0x19   : > { %s803_s18 = sshll.u32 %s1110_s13, 2  ;;  %s831_s19 = sshll.u32 %s1110_s13, 5 }
  0x1a   : > { %s313_s8 = scalar_lea.vmem %s1257_s0, %s803_s18  ;;  %s318_s14 = scalar_lea.vmem %s1258_s1, %s831_s19 }
  0x1b   : > { %v331_v11 = vld [vmem:[%s313_s8] sm:$0xf]  ;;  %s324_s30 = scalar_lea.vmem %s1259_s2, %s1110_s13  ;;  %v925_v16 = vld [vmem:[%s318_s14 + $0x8] sm:$0xff]   ;;  %v926_v17 = vld [vmem:[%s318_s14 + $0x10] sm:$0xff]   ;;  %s1161_s15 = scalar_lea.vmem %s1263_s6, %s831_s19 }
  0x1c   : > { %854 = vmatprep.subr.msk.mxu1 %vm470_vm1, %v331_v11  ;;  %v808_v12 = vld [vmem:[%s324_s30] ss:$0 sm:$0xff]  ;;  %v927_v18 = vld [vmem:[%s318_s14 + $0x18] sm:$0xff]   ;;  %620 = vst.msk [vmem:[%s1161_s15] sm:$0xff] %vm619_vm6, %v1010_v19  ;;  %621 = vst.msk [vmem:[%s1161_s15 + $0x8] sm:$0xff] %vm619_vm6, %v1010_v19  ;;  %s1185_s18 = scalar_lea.hbm %s1262_s5, %s833_s16  ;;  %s932_s29 = sshll.u32 %s1011_s24, 4  ;;  %s933_s29 = int_to_ptr.vmem [resolvable:$false] %s932_s29 }
  0x1d   : > { %v924_v13 = vld [vmem:[%s318_s14] sm:$0xff]   ;;  %vm348_vm3 = vcmp.eq.s32.totalorder %v342_v2, %v808_v12  ;;  %vm349_vm4 = vcmp.eq.s32.totalorder %v343_v6, %v808_v12  ;;  %855 = vmatpush3.msk.msra.mxu1 %vm470_vm1, %v331_v11  ;;  %622 = vst.msk [vmem:[%s1161_s15 + $0x10] sm:$0xff] %vm619_vm6, %v1010_v19  ;;  %623 = vst.msk [vmem:[%s1161_s15 + $0x18] sm:$0xff] %vm619_vm6, %v1010_v19  ;;  %s297_s14 = sand.u32 1, %s990_s22   ;;  %s934_s8 = scalar_lea.vmem %s933_s29, 2048 }
  0x1e   : > { %vm815_vm5 = vmpackc.low %vm349_vm4, %vm348_vm3  ;;  %857 = vmatmul.mubr.msk.f32.vlgmr.msra.gmra.mrb[0].mxu1 %vm457_vm0, %v454_v8  ;;  %846 = vmatprep.mubr.msk.bf16.mxu0 %vm375_vm2, %v924_v13  ;;  %s802_s13 = sshll.u32 %s297_s14, 6  ;;  %s1191_s28 = scalar_lea.sflag [#allocation3], %s297_s14 }
  0x1f   : > { %844 = vmatprep.subr.msk.bf16.mxu0 %vm815_vm5, %v1009_v15  ;;  %859 = vmatprep.mubr.msk.f32.mxu1 %vm457_vm0, %v455_v9  ;;  %s1170_s19 = scalar_lea.vmem [#allocation2], %s802_s13 }
  0x20   : > { %845 = vmatpush3.bf16.msk.msra.mxu0 %vm815_vm5, %v1009_v15  ;;  %s670_s17 = sshll.u32 %s1170_s19, 4  ;;  %s1187_s17 = int_to_ptr.vmem [resolvable:$true] %s670_s17 }
  0x21   : > { %s928_s30 = scalar_lea.vmem %s1187_s17, 1024  ;;  %p935_p1 = scmp.lt.s32.totalorder %s1187_s17, %s933_s29 }
  0x22   : > { %860 = vmatmul.mubr.msk.f32.gmra.mrb[2].mxu1 %vm457_vm0, %v456_v14  ;;  %p929_p12 = scmp.ne.s32.totalorder %s1187_s17, %s928_s30  ;;  %p936_p2 = scmp.lt.s32.totalorder %s934_s8, %s928_s30 }
  0x23   : > { %847 = vmatmul.mubr.msk.bf16.vlgmr.msra.gmra.mrb[0].mxu0 %vm375_vm2, %v925_v16 }
  0x24   : > { %850 = vmatprep.mubr.msk.bf16.mxu0 %vm375_vm2, %v926_v17  ;;  %p930_p13 = pnand %p929_p12, %p1089_p4  ;;  %p937_p3 = por %p936_p2, %p935_p1 }
  0x26   : > { %p931_p0 = pneg %p930_p13 }
  0x28   : > { %p938_p5 = pnand %p937_p3, %p931_p0 }
  0x2b   : > { %851 = vmatmul.mubr.msk.bf16.gmra.mrb[4].mxu0 %vm375_vm2, %v927_v18 }
  0x90   : > { %v566_v23 = vpop.permute.xlu0 %565 }
  0x91   : > { %v576_v21 = vpop.permute.xlu1 %575 }
  0x94   : > { %v571_v37 = vpop.permute.xlu0 %570 }
  0x95   : > { %v581_v31 = vpop.permute.xlu1 %580 }
  0xf1   : > { %v858_v20 = vpop.f32.mrb[0].mxu1 }
  0xf2   : > { %v540_v22 = vpop.f32.mrb[1].mxu1 }
  0xf5   : > { %v861_v24 = vpop.f32.mrb[2].mxu1 }
  0xf6   : > { %v848_v25 = vpop.f32.mrb[0].mxu0  ;;  %v550_v26 = vpop.f32.mrb[3].mxu1 }
  0xf7   : > { %v422_v27 = vpop.f32.mrb[1].mxu0  ;;  %v551_v28 = vadd.f32 %v848_v25, %v550_v26 }
  0xf8   : > { %v541_v29 = vadd.f32 %v540_v22, %v422_v27  ;;  %v849_v30 = vpop.f32.mrb[2].mxu0 }
  0xf9   : > { %v556_v32 = vadd.f32 %v861_v24, %v849_v30  ;;  %v585_v33 = vadd.f32 %v576_v21, %v551_v28  ;;  %v425_v34 = vpop.f32.mrb[3].mxu0 }
  0xfa   : > { %v583_v35 = vadd.f32 %v566_v23, %v541_v29  ;;  %v546_v36 = vadd.f32 %v858_v20, %v425_v34 }
  0xfb   : > { %589 = vst [vmem:[%s1170_s19 + $0x10] sm:$0xff] %v585_v33  ;;  %v586_v38 = vadd.f32 %v581_v31, %v556_v32  ;;  %v605_v41 = vmul.f32 %v585_v33, %v585_v33 }
  0xfc   : > { %587 = vst [vmem:[%s1170_s19] sm:$0xff] %v583_v35  ;;  %v584_v39 = vadd.f32 %v571_v37, %v546_v36  ;;  %595 = vadd.xlane.f32.xlu0 %v583_v35  ;;  %v603_v40 = vmul.f32 %v583_v35, %v583_v35 }
  0xfd   : > { %590 = vst [vmem:[%s1170_s19 + $0x18] sm:$0xff] %v586_v38  ;;  %v606_v43 = vmul.f32 %v586_v38, %v586_v38 }
  0xfe   : > { %588 = vst [vmem:[%s1170_s19 + $0x8] sm:$0xff] %v584_v39  ;;  %597 = vadd.xlane.f32.xlu1 %v584_v39  ;;  %v604_v42 = vmul.f32 %v584_v39, %v584_v39  ;;  %v852_v44 = vpop.f32.mrb[4].mxu0 }
  0xff   : > { %593 = vst [vmem:[%s1170_s19 + $0x30] sm:$0xff] %v852_v44  ;;  %v438_v45 = vpop.f32.mrb[5].mxu0 }
 0x100   : > { %599 = vadd.xlane.f32.xlu0 %v585_v33  ;;  %591 = vst [vmem:[%s1170_s19 + $0x20] sm:$0xff] %v438_v45  ;;  %v853_v46 = vpop.f32.mrb[6].mxu0 }
 0x101   : > { %594 = vst [vmem:[%s1170_s19 + $0x38] sm:$0xff] %v853_v46  ;;  %v441_v47 = vpop.f32.mrb[7].mxu0 }
 0x102   : > { %607 = vadd.xlane.f32.xlu1 %v603_v40  ;;  %592 = vst [vmem:[%s1170_s19 + $0x28] sm:$0xff] %v441_v47 }
 0x104   : > { %601 = vadd.xlane.f32.xlu0 %v586_v38 }
 0x106   : > { %611 = vadd.xlane.f32.xlu1 %v605_v41 }
 0x108   : > { %609 = vadd.xlane.f32.xlu0 %v604_v42 }
 0x10c   : > { %613 = vadd.xlane.f32.xlu0 %v606_v43 }
 0x10d   : > { %941 = shalt.err (!%p938_p5)
}
 0x10e   : > { %s942_s11 = scalar_lea.hbm %s1185_s18, 1024  ;;  %s946_s13 = scalar_lea.hbm %s1262_s5, 2048 }
 0x10f   : > { %p943_p6 = scmp.ne.s32.totalorder %s1185_s18, %s942_s11  ;;  %p947_p10 = scmp.lt.u32.totalorder %s1185_s18, %s1262_s5 }
 0x110   : > { %p948_p11 = scmp.lt.u32.totalorder %s946_s13, %s942_s11  ;;  %p950_p13 = scmp.lt.u32.totalorder %s942_s11, %s1185_s18 }
 0x111   : > { %p944_p7 = pnand %p943_p6, %p1089_p4 }
 0x112   : > { %p949_p12 = por %p948_p11, %p947_p10 }
 0x113   : > { %p945_p9 = pneg %p944_p7 }
 0x114   : > { %p951_p0 = por %p950_p13, %p949_p12 }
 0x116   : > { %p952_p1 = pnand %p951_p0, %p945_p9 }
 0x118   : > { %955 = shalt.err (!%p952_p1)
}
 0x119   : > { %s1012_s20 = smov 128   ;;  %s1013_s27 = smov 8   ;;  %v624_v48 = vld [vmem:[%s1161_s15] sm:$0xff]  ;;  %vm632_vm7 = vcmask 7168   ;;  %v625_v50 = vld [vmem:[%s1161_s15 + $0x8] sm:$0xff]  ;;  %v626_v53 = vld [vmem:[%s1161_s15 + $0x10] sm:$0xff] }
 0x11a   : > { %862 = dma.vmem_to_hbm [thread:$0]  (%p1089_p4), %s1187_s17, 1024, %s1185_s18, %s1191_s28, %s1012_s20, %s1012_s20, %s1013_s27   ;;  %vm645_vm8 = vcmask 15368  }
 0x11b   : > { %v627_v57 = vld [vmem:[%s1161_s15 + $0x18] sm:$0xff] }
 0x189   : > { %v596_v49 = vpop.xlane.xlu0 %595 }
 0x18a   : > { %v628_v51 = vadd.f32 %v624_v48, %v596_v49 }
 0x18b   : > { %v598_v52 = vpop.xlane.xlu1 %597 }
 0x18c   : > { %633 = vst.msk [vmem:[%s1161_s15] sm:$0xff] %vm632_vm7, %v628_v51  ;;  %v629_v54 = vadd.f32 %v625_v50, %v598_v52 }
 0x18d   : > { %v600_v55 = vpop.xlane.xlu0 %599 }
 0x18e   : > { %634 = vst.msk [vmem:[%s1161_s15 + $0x8] sm:$0xff] %vm632_vm7, %v629_v54  ;;  %v630_v56 = vadd.f32 %v626_v53, %v600_v55 }
 0x18f   : > { %v608_v58 = vpop.xlane.xlu1 %607 }
 0x190   : > { %635 = vst.msk [vmem:[%s1161_s15 + $0x10] sm:$0xff] %vm632_vm7, %v630_v56 }
 0x191   : > { %v602_v59 = vpop.xlane.xlu0 %601 }
 0x192   : > { %v631_v60 = vadd.f32 %v627_v57, %v602_v59 }
 0x193   : > { %v637_v61 = vld [vmem:[%s1161_s15] sm:$0xff]  ;;  %v612_v3 = vpop.xlane.xlu1 %611 }
 0x194   : > { %v641_v62 = vadd.f32 %v637_v61, %v608_v58  ;;  %636 = vst.msk [vmem:[%s1161_s15 + $0x18] sm:$0xff] %vm632_vm7, %v631_v60 }
 0x195   : > { %v638_v63 = vld [vmem:[%s1161_s15 + $0x8] sm:$0xff]  ;;  %v610_v0 = vpop.xlane.xlu0 %609 }
 0x196   : > { %646 = vst.msk [vmem:[%s1161_s15] sm:$0xff] %vm645_vm8, %v641_v62  ;;  %v642_v1 = vadd.f32 %v638_v63, %v610_v0 }
 0x197   : > { %v639_v2 = vld [vmem:[%s1161_s15 + $0x10] sm:$0xff] }
 0x198   : > { %v643_v4 = vadd.f32 %v639_v2, %v612_v3  ;;  %647 = vst.msk [vmem:[%s1161_s15 + $0x8] sm:$0xff] %vm645_vm8, %v642_v1 }
 0x199   : > { %v614_v6 = vpop.xlane.xlu0 %613 }
 0x19a   : > { %648 = vst.msk [vmem:[%s1161_s15 + $0x10] sm:$0xff] %vm645_vm8, %v643_v4 }
 0x19b   : > { %v640_v5 = vld [vmem:[%s1161_s15 + $0x18] sm:$0xff] }
 0x19c   : > { %v644_v7 = vadd.f32 %v640_v5, %v614_v6 }
 0x19e   : > { %649 = vst.msk [vmem:[%s1161_s15 + $0x18] sm:$0xff] %vm645_vm8, %v644_v7 }
 0x19f PF: > { %p868_p4 = scmp.ge.s32.totalorder %s1006_s26, 2  ;;  %s688_s7 = sand.u32 1, %s986_s21  }
 0x1a0   : > { %s689_s17 = scalar_lea.sflag [#allocation3], %s688_s7 }
 0x1a1   : > { %p865_p2 = pnand %p868_p4, %p1096_p8 }
 0x1a3   : > { %981 = dma.done.wait (!%p865_p2), %s689_s17, 1024  }
 0x1a4   : > { %983 = vsyncadd (!%p865_p2), %s689_s17, 4294966272  ;;  %s20_s26 = sadd.s32 1, %s1006_s26   ;;  %s1268_s18 = sld [smem:[#allocation5_spill]] }
 0x1a5   : > { %p17_p3 = scmp.ge.s32.totalorder %s20_s26, 4   ;;  %s1269_s21 = smov %s990_s22 }
 0x1a6   : > { %s1270_s22 = smov %s994_s23  ;;  %s1271_s23 = smov %s1102_s10 }
 0x1a7   : > { %s1272_s24 = smov %s1002_s25  ;;  %19 = sbr.rel (!%p17_p3) target bundleno = 4 (0x4), region = 97 }
 0x1aa   : > { %s1273_s25 = smov %s1268_s18 }
 0x1ae   :  { %702 = vsyncpa [#allocation3], 1 }
 0x1af   :  { %704 = vsyncpa [#allocation3 + $0x1], 1 }

</bundles_post_ra>
